<compile_context>
chip_gen: v6e
topology: v6e:2x2x1
jax: 0.10.0
libtpu: 0.0.40
codegen_flags: <defaults>
</compile_context>

<pallas_src>
import jax
import jax.numpy as jnp
from jax.experimental import pallas as pl
from jax.experimental.pallas import tpu as pltpu

# ---------------- model hyper-params (small, consistent with the module) ----
B = 2          # batch
T = 8          # sequence length (== block_size)
N_EMBD = 32    # n_embd
N_HEAD = 4     # n_head
HEAD_SIZE = N_EMBD // N_HEAD
HIDDEN = 4 * N_EMBD
EPS = 1e-5
BT = B * T
LANES = 128
NEG = -1e9     # additive mask value (exp underflows to exactly 0 in f32)

# ---- packed-parameter buffer row layout (all slabs padded to 128 lanes) ----
VEC_R0 = 0                      # rows 0..7 : ln1_g, ln1_b, ln2_g, ln2_b, bp, b2, b1
MASK_R0 = 8                     # rows 8..23 : (BT, BT) additive mask bias
WQ_R0 = MASK_R0 + BT            # rows 24..55 : Wq (C, C), head-major cols, pre-scaled
WKV_R0 = WQ_R0 + N_EMBD         # rows 56..119: [Wk^T ; Wv^T] (2C, C), feature-major
WP_R0 = WKV_R0 + 2 * N_EMBD     # rows 120..151: Wproj (C, C)
W1_R0 = WP_R0 + N_EMBD          # rows 152..183: ff W1 (C, 4C)
W2_R0 = W1_R0 + N_EMBD          # rows 184..311: ff W2 (4C, C)
PROWS = W2_R0 + HIDDEN          # 312 rows total (multiple of 8)


def _layernorm(h, gamma, beta):
    mu = jnp.mean(h, axis=-1, keepdims=True)
    var = jnp.mean((h - mu) ** 2, axis=-1, keepdims=True)
    return (h - mu) * jax.lax.rsqrt(var + EPS) * gamma + beta


def block_kernel(x_ref, p_ref, o_ref):
    x = x_ref[...]                                            # (BT, C)

    # ---- static views into the single packed parameter buffer --------------
    vec = p_ref[0:8, :]                                       # (8, 128): one vreg
    g1 = vec[0:1, :N_EMBD]
    be1 = vec[1:2, :N_EMBD]
    g2 = vec[2:3, :N_EMBD]
    be2 = vec[3:4, :N_EMBD]
    bp = vec[4:5, :N_EMBD]
    b2 = vec[5:6, :N_EMBD]
    b1 = vec[6:7, :HIDDEN]
    mbias = p_ref[MASK_R0:MASK_R0 + BT, :BT]                  # (BT, BT) additive mask

    # ---- ln1 + multi-head causal self-attention -----------------------------
    h = _layernorm(x, g1, be1)

    # Q token-major (scale already folded into the weights host-side).
    q2d = jnp.dot(h, p_ref[WQ_R0:WQ_R0 + N_EMBD, :N_EMBD],
                  preferred_element_type=jnp.float32)         # (BT, C)
    # K and V feature-major: one rhs-transposed matmul -> (2C, BT); per-head
    # slices below are sublane-tile-aligned (free), no lane selects.
    kvT = jax.lax.dot_general(
        p_ref[WKV_R0:WKV_R0 + 2 * N_EMBD, :N_EMBD], h,
        (((1,), (1,)), ((), ())),
        preferred_element_type=jnp.float32)                   # (2C, BT)

    acc = None
    for hd in range(N_HEAD):                                  # unrolled, straight-line
        lo = hd * HEAD_SIZE
        q_h = q2d[:, lo:lo + HEAD_SIZE]                       # (BT, hs)
        kT_h = kvT[lo:lo + HEAD_SIZE, :]                      # (hs, BT)
        vT_h = kvT[N_EMBD + lo:N_EMBD + lo + HEAD_SIZE, :]    # (hs, BT)

        s = jnp.dot(q_h, kT_h, preferred_element_type=jnp.float32)   # (BT, BT)
        s = s + mbias                                         # mask BEFORE the max
        p = jnp.exp(s - jnp.max(s, axis=-1, keepdims=True))
        p = p * pl.reciprocal(jnp.sum(p, axis=-1, keepdims=True), approx=True)
        # TODO(synk): attention dropout omitted (identity at inference).

        o_h = jax.lax.dot_general(p, vT_h, (((1,), (1,)), ((), ())),
                                  preferred_element_type=jnp.float32)  # (BT, hs)
        # Head-wise projection straight from the packed ref (no concat).
        wp_h = p_ref[WP_R0 + lo:WP_R0 + lo + HEAD_SIZE, :N_EMBD]       # (hs, C)
        c = jnp.dot(o_h, wp_h, preferred_element_type=jnp.float32)     # (BT, C)
        acc = c if acc is None else acc + c

    # TODO(synk): residual/proj dropout omitted (identity at inference).
    x1 = x + acc + bp

    # ---- ln2 + feed-forward --------------------------------------------------
    h2 = _layernorm(x1, g2, be2)
    ff = jnp.dot(h2, p_ref[W1_R0:W1_R0 + N_EMBD, :HIDDEN],
                 preferred_element_type=jnp.float32) + b1
    ff = jnp.maximum(ff, 0.0)
    ff = jnp.dot(ff, p_ref[W2_R0:W2_R0 + HIDDEN, :N_EMBD],
                 preferred_element_type=jnp.float32) + b2
    # TODO(synk): ffwd dropout omitted (identity at inference).

    o_ref[...] = x1 + ff


def make_params(key):
    """Deterministic parameter init (shapes mirror the PyTorch module)."""
    ks = jax.random.split(key, 8)
    s = 0.02
    return dict(
        ln1_g=jnp.ones((1, N_EMBD), jnp.float32),
        ln1_b=jnp.zeros((1, N_EMBD), jnp.float32),
        wk=s * jax.random.normal(ks[0], (N_HEAD, N_EMBD, HEAD_SIZE), jnp.float32),
        wq=s * jax.random.normal(ks[1], (N_HEAD, N_EMBD, HEAD_SIZE), jnp.float32),
        wv=s * jax.random.normal(ks[2], (N_HEAD, N_EMBD, HEAD_SIZE), jnp.float32),
        wp=s * jax.random.normal(ks[3], (N_EMBD, N_EMBD), jnp.float32),
        bp=s * jax.random.normal(ks[4], (1, N_EMBD), jnp.float32),
        ln2_g=jnp.ones((1, N_EMBD), jnp.float32),
        ln2_b=jnp.zeros((1, N_EMBD), jnp.float32),
        w1=s * jax.random.normal(ks[5], (N_EMBD, HIDDEN), jnp.float32),
        b1=s * jax.random.normal(ks[6], (1, HIDDEN), jnp.float32),
        w2=s * jax.random.normal(ks[7], (HIDDEN, N_EMBD), jnp.float32),
        b2=jnp.zeros((1, N_EMBD), jnp.float32),
    )


def pack_params(p):
    """Pack ALL params + the attention-mask bias into ONE (PROWS, 128) buffer.

    Call ONCE when parameters are created -- this is deliberately outside the
    per-forward-call path (it contains the transposes/concats/scaling).
    """
    scale = N_EMBD ** (-0.5)   # PyTorch module scales by C**-0.5 with C = n_embd
    # Head-major (C_in, C_out) projection matrices.
    wq = jnp.transpose(p["wq"], (1, 0, 2)).reshape(N_EMBD, N_EMBD) * scale
    wk = jnp.transpose(p["wk"], (1, 0, 2)).reshape(N_EMBD, N_EMBD)
    wv = jnp.transpose(p["wv"], (1, 0, 2)).reshape(N_EMBD, N_EMBD)
    wkvT = jnp.concatenate([wk.T, wv.T], axis=0)              # (2C, C) feature-major

    # Combined causal + same-batch additive mask over the flattened (BT, BT).
    r = jnp.arange(BT)[:, None]
    c = jnp.arange(BT)[None, :]
    allowed = (r // T == c // T) & (r >= c)
    mbias = jnp.where(allowed, 0.0, NEG).astype(jnp.float32)

    buf = jnp.zeros((PROWS, LANES), jnp.float32)

    def put(b, r0, arr):
        arr = jnp.asarray(arr, jnp.float32)
        return b.at[r0:r0 + arr.shape[0], :arr.shape[1]].set(arr)

    buf = put(buf, 0, p["ln1_g"])
    buf = put(buf, 1, p["ln1_b"])
    buf = put(buf, 2, p["ln2_g"])
    buf = put(buf, 3, p["ln2_b"])
    buf = put(buf, 4, p["bp"])
    buf = put(buf, 5, p["b2"])
    buf = put(buf, 6, p["b1"])
    buf = put(buf, MASK_R0, mbias)
    buf = put(buf, WQ_R0, wq)
    buf = put(buf, WKV_R0, wkvT)
    buf = put(buf, WP_R0, p["wp"])
    buf = put(buf, W1_R0, p["w1"])
    buf = put(buf, W2_R0, p["w2"])
    return buf


@jax.jit
def block_forward(x, packed):
    x2d = x.reshape(BT, N_EMBD)
    out2d = pl.pallas_call(
        block_kernel,
        out_shape=jax.ShapeDtypeStruct((BT, N_EMBD), jnp.float32),
        grid_spec=pltpu.PrefetchScalarGridSpec(
            num_scalar_prefetch=0,
            grid=(1,),                                   # single grid step
            in_specs=[
                pl.BlockSpec((BT, N_EMBD), lambda i: (0, 0)),     # activations
                pl.BlockSpec((PROWS, LANES), lambda i: (0, 0)),   # packed params
            ],
            out_specs=pl.BlockSpec((BT, N_EMBD), lambda i: (0, 0)),
        ),
        compiler_params=pltpu.CompilerParams(
            dimension_semantics=("arbitrary",)),
    )(x2d, packed)
    return out2d.reshape(B, T, N_EMBD)


# ---------------- pure-JAX reference (mirrors the PyTorch forward) ----------
def block_reference(x, p):
    def ln(h, g, b):
        mu = jnp.mean(h, axis=-1, keepdims=True)
        var = jnp.mean((h - mu) ** 2, axis=-1, keepdims=True)
        return (h - mu) / jnp.sqrt(var + EPS) * g[0] + b[0]

    h = ln(x, p["ln1_g"], p["ln1_b"])
    outs = []
    scale = N_EMBD ** (-0.5)
    mask = jnp.tril(jnp.ones((T, T), bool))
    for hd in range(N_HEAD):
        k = h @ p["wk"][hd]
        q = h @ p["wq"][hd]
        v = h @ p["wv"][hd]
        wei = (q @ jnp.swapaxes(k, -1, -2)) * scale
        wei = jnp.where(mask, wei, -jnp.inf)
        wei = jax.nn.softmax(wei, axis=-1)
        outs.append(wei @ v)
    sa = jnp.concatenate(outs, axis=-1) @ p["wp"] + p["bp"][0]
    x1 = x + sa
    h2 = ln(x1, p["ln2_g"], p["ln2_b"])
    ff = jnp.maximum(h2 @ p["w1"] + p["b1"][0], 0.0) @ p["w2"] + p["b2"][0]
    return x1 + ff


if __name__ == "__main__":
    key = jax.random.PRNGKey(0)
    kx, kp = jax.random.split(key)
    x = jax.random.normal(kx, (B, T, N_EMBD), jnp.float32)
    params = make_params(kp)

    # One-time packing (NOT on the per-call path).
    packed = jax.block_until_ready(pack_params(params))

    out = jax.block_until_ready(block_forward(x, packed))
    ref = jax.block_until_ready(block_reference(x, params))

    assert out.shape == (B, T, N_EMBD)
    err = float(jnp.max(jnp.abs(out - ref)))
    assert jnp.allclose(out, ref, atol=1e-4, rtol=1e-4), err
    print("KERNEL_OK")
</pallas_src>

<mosaic_0001>
module attributes {stable_mosaic.version = 11 : i64} {
  func.func @block_kernel(%arg0: i32, %arg1: memref<16x32xf32, #tpu.memory_space<vmem>>, %arg2: memref<312x128xf32, #tpu.memory_space<vmem>>, %arg3: memref<16x32xf32, #tpu.memory_space<vmem>>) attributes {dimension_semantics = [#tpu.dimension_semantics<arbitrary>], iteration_bounds = array<i64: 1>, scalar_prefetch = 0 : i64, scratch_operands = 0 : i64, tpu.core_type = #tpu.core_type<tc>, window_params = [{pipeline_mode = #tpu.pipeline_mode<synchronous>, transform_indices = @transform_0, window_bounds = array<i64: 16, 32>}, {pipeline_mode = #tpu.pipeline_mode<synchronous>, transform_indices = @transform_1, window_bounds = array<i64: 312, 128>}, {pipeline_mode = #tpu.pipeline_mode<synchronous>, transform_indices = @transform_2, window_bounds = array<i64: 16, 32>}]} {
    %c0 = arith.constant 0 : index
    %c0_0 = arith.constant 0 : index
    %0 = vector.load %arg1[%c0, %c0_0] : memref<16x32xf32, #tpu.memory_space<vmem>>, vector<16x32xf32>
    %c0_1 = arith.constant 0 : index
    %c0_2 = arith.constant 0 : index
    %1 = vector.load %arg2[%c0_1, %c0_2] : memref<312x128xf32, #tpu.memory_space<vmem>>, vector<8x128xf32>
    %2 = vector.extract_strided_slice %1 {offsets = [0, 0], sizes = [1, 32], strides = [1, 1]} : vector<8x128xf32> to vector<1x32xf32>
    %3 = vector.extract_strided_slice %1 {offsets = [1, 0], sizes = [1, 32], strides = [1, 1]} : vector<8x128xf32> to vector<1x32xf32>
    %4 = vector.extract_strided_slice %1 {offsets = [2, 0], sizes = [1, 32], strides = [1, 1]} : vector<8x128xf32> to vector<1x32xf32>
    %5 = vector.extract_strided_slice %1 {offsets = [3, 0], sizes = [1, 32], strides = [1, 1]} : vector<8x128xf32> to vector<1x32xf32>
    %6 = vector.extract_strided_slice %1 {offsets = [4, 0], sizes = [1, 32], strides = [1, 1]} : vector<8x128xf32> to vector<1x32xf32>
    %7 = vector.extract_strided_slice %1 {offsets = [5, 0], sizes = [1, 32], strides = [1, 1]} : vector<8x128xf32> to vector<1x32xf32>
    %8 = vector.extract_strided_slice %1 {offsets = [6, 0], sizes = [1, 128], strides = [1, 1]} : vector<8x128xf32> to vector<1x128xf32>
    %c8 = arith.constant 8 : index
    %c0_3 = arith.constant 0 : index
    %9 = vector.load %arg2[%c8, %c0_3] : memref<312x128xf32, #tpu.memory_space<vmem>>, vector<16x16xf32>
    %cst = arith.constant dense<0.000000e+00> : vector<16xf32>
    %10 = vector.multi_reduction <add>, %0, %cst [1] : vector<16x32xf32> to vector<16xf32>
    %11 = vector.shape_cast %10 : vector<16xf32> to vector<16x1xf32>
    %cst_4 = arith.constant 3.200000e+01 : f32
    %12 = vector.broadcast %cst_4 : f32 to vector<16x1xf32>
    %13 = arith.divf %11, %12 : vector<16x1xf32>
    %14 = vector.broadcast %13 : vector<16x1xf32> to vector<16x32xf32>
    %15 = arith.subf %0, %14 : vector<16x32xf32>
    %16 = arith.mulf %15, %15 : vector<16x32xf32>
    %cst_5 = arith.constant dense<0.000000e+00> : vector<16xf32>
    %17 = vector.multi_reduction <add>, %16, %cst_5 [1] : vector<16x32xf32> to vector<16xf32>
    %18 = vector.shape_cast %17 : vector<16xf32> to vector<16x1xf32>
    %cst_6 = arith.constant 3.200000e+01 : f32
    %19 = vector.broadcast %cst_6 : f32 to vector<16x1xf32>
    %20 = arith.divf %18, %19 : vector<16x1xf32>
    %21 = vector.broadcast %13 : vector<16x1xf32> to vector<16x32xf32>
    %22 = arith.subf %0, %21 : vector<16x32xf32>
    %cst_7 = arith.constant 9.99999974E-6 : f32
    %23 = vector.broadcast %cst_7 : f32 to vector<16x1xf32>
    %24 = arith.addf %20, %23 : vector<16x1xf32>
    %25 = math.rsqrt %24 : vector<16x1xf32>
    %26 = vector.broadcast %25 : vector<16x1xf32> to vector<16x32xf32>
    %27 = arith.mulf %22, %26 : vector<16x32xf32>
    %28 = vector.broadcast %2 : vector<1x32xf32> to vector<16x32xf32>
    %29 = arith.mulf %27, %28 : vector<16x32xf32>
    %30 = vector.broadcast %3 : vector<1x32xf32> to vector<16x32xf32>
    %31 = arith.addf %29, %30 : vector<16x32xf32>
    %c24 = arith.constant 24 : index
    %c0_8 = arith.constant 0 : index
    %32 = vector.load %arg2[%c24, %c0_8] : memref<312x128xf32, #tpu.memory_space<vmem>>, vector<32x32xf32>
    %cst_9 = arith.constant dense<0.000000e+00> : vector<16x32xf32>
    %33 = tpu.matmul %31, %32, %cst_9 {dimension_numbers = #tpu.dot_dimension_numbers<[1], [0], [0], [1], [0, 0, 1, 1], [], []>} : vector<16x32xf32>, vector<32x32xf32>, vector<16x32xf32> -> vector<16x32xf32>
    %c56 = arith.constant 56 : index
    %c0_10 = arith.constant 0 : index
    %34 = vector.load %arg2[%c56, %c0_10] : memref<312x128xf32, #tpu.memory_space<vmem>>, vector<64x32xf32>
    %cst_11 = arith.constant dense<0.000000e+00> : vector<64x16xf32>
    %35 = tpu.matmul %34, %31, %cst_11 {dimension_numbers = #tpu.dot_dimension_numbers<[1], [1], [0], [0], [0, 0, 1, 0], [], []>} : vector<64x32xf32>, vector<16x32xf32>, vector<64x16xf32> -> vector<64x16xf32>
    %36 = vector.extract_strided_slice %33 {offsets = [0, 0], sizes = [16, 8], strides = [1, 1]} : vector<16x32xf32> to vector<16x8xf32>
    %37 = vector.extract_strided_slice %35 {offsets = [0, 0], sizes = [8, 16], strides = [1, 1]} : vector<64x16xf32> to vector<8x16xf32>
    %38 = vector.extract_strided_slice %35 {offsets = [32, 0], sizes = [8, 16], strides = [1, 1]} : vector<64x16xf32> to vector<8x16xf32>
    %cst_12 = arith.constant dense<0.000000e+00> : vector<16x16xf32>
    %39 = tpu.matmul %36, %37, %cst_12 {dimension_numbers = #tpu.dot_dimension_numbers<[1], [0], [0], [1], [0, 0, 1, 1], [], []>} : vector<16x8xf32>, vector<8x16xf32>, vector<16x16xf32> -> vector<16x16xf32>
    %40 = arith.addf %39, %9 : vector<16x16xf32>
    %cst_13 = arith.constant dense<0xFF800000> : vector<16xf32>
    %41 = vector.multi_reduction <maximumf>, %40, %cst_13 [1] : vector<16x16xf32> to vector<16xf32>
    %42 = vector.shape_cast %41 : vector<16xf32> to vector<16x1xf32>
    %43 = vector.broadcast %42 : vector<16x1xf32> to vector<16x16xf32>
    %44 = arith.subf %40, %43 : vector<16x16xf32>
    %45 = math.exp %44 : vector<16x16xf32>
    %cst_14 = arith.constant dense<0.000000e+00> : vector<16xf32>
    %46 = vector.multi_reduction <add>, %45, %cst_14 [1] : vector<16x16xf32> to vector<16xf32>
    %47 = vector.shape_cast %46 : vector<16xf32> to vector<16x1xf32>
    %48 = tpu.reciprocal %47 {approx = true} : vector<16x1xf32> -> vector<16x1xf32>
    %49 = vector.broadcast %48 : vector<16x1xf32> to vector<16x16xf32>
    %50 = arith.mulf %45, %49 : vector<16x16xf32>
    %cst_15 = arith.constant dense<0.000000e+00> : vector<16x8xf32>
    %51 = tpu.matmul %50, %38, %cst_15 {dimension_numbers = #tpu.dot_dimension_numbers<[1], [1], [0], [0], [0, 0, 1, 0], [], []>} : vector<16x16xf32>, vector<8x16xf32>, vector<16x8xf32> -> vector<16x8xf32>
    %c120 = arith.constant 120 : index
    %c0_16 = arith.constant 0 : index
    %52 = vector.load %arg2[%c120, %c0_16] : memref<312x128xf32, #tpu.memory_space<vmem>>, vector<8x32xf32>
    %cst_17 = arith.constant dense<0.000000e+00> : vector<16x32xf32>
    %53 = tpu.matmul %51, %52, %cst_17 {dimension_numbers = #tpu.dot_dimension_numbers<[1], [0], [0], [1], [0, 0, 1, 1], [], []>} : vector<16x8xf32>, vector<8x32xf32>, vector<16x32xf32> -> vector<16x32xf32>
    %54 = vector.extract_strided_slice %33 {offsets = [0, 8], sizes = [16, 8], strides = [1, 1]} : vector<16x32xf32> to vector<16x8xf32>
    %55 = vector.extract_strided_slice %35 {offsets = [8, 0], sizes = [8, 16], strides = [1, 1]} : vector<64x16xf32> to vector<8x16xf32>
    %56 = vector.extract_strided_slice %35 {offsets = [40, 0], sizes = [8, 16], strides = [1, 1]} : vector<64x16xf32> to vector<8x16xf32>
    %cst_18 = arith.constant dense<0.000000e+00> : vector<16x16xf32>
    %57 = tpu.matmul %54, %55, %cst_18 {dimension_numbers = #tpu.dot_dimension_numbers<[1], [0], [0], [1], [0, 0, 1, 1], [], []>} : vector<16x8xf32>, vector<8x16xf32>, vector<16x16xf32> -> vector<16x16xf32>
    %58 = arith.addf %57, %9 : vector<16x16xf32>
    %cst_19 = arith.constant dense<0xFF800000> : vector<16xf32>
    %59 = vector.multi_reduction <maximumf>, %58, %cst_19 [1] : vector<16x16xf32> to vector<16xf32>
    %60 = vector.shape_cast %59 : vector<16xf32> to vector<16x1xf32>
    %61 = vector.broadcast %60 : vector<16x1xf32> to vector<16x16xf32>
    %62 = arith.subf %58, %61 : vector<16x16xf32>
    %63 = math.exp %62 : vector<16x16xf32>
    %cst_20 = arith.constant dense<0.000000e+00> : vector<16xf32>
    %64 = vector.multi_reduction <add>, %63, %cst_20 [1] : vector<16x16xf32> to vector<16xf32>
    %65 = vector.shape_cast %64 : vector<16xf32> to vector<16x1xf32>
    %66 = tpu.reciprocal %65 {approx = true} : vector<16x1xf32> -> vector<16x1xf32>
    %67 = vector.broadcast %66 : vector<16x1xf32> to vector<16x16xf32>
    %68 = arith.mulf %63, %67 : vector<16x16xf32>
    %cst_21 = arith.constant dense<0.000000e+00> : vector<16x8xf32>
    %69 = tpu.matmul %68, %56, %cst_21 {dimension_numbers = #tpu.dot_dimension_numbers<[1], [1], [0], [0], [0, 0, 1, 0], [], []>} : vector<16x16xf32>, vector<8x16xf32>, vector<16x8xf32> -> vector<16x8xf32>
    %c128 = arith.constant 128 : index
    %c0_22 = arith.constant 0 : index
    %70 = vector.load %arg2[%c128, %c0_22] : memref<312x128xf32, #tpu.memory_space<vmem>>, vector<8x32xf32>
    %cst_23 = arith.constant dense<0.000000e+00> : vector<16x32xf32>
    %71 = tpu.matmul %69, %70, %cst_23 {dimension_numbers = #tpu.dot_dimension_numbers<[1], [0], [0], [1], [0, 0, 1, 1], [], []>} : vector<16x8xf32>, vector<8x32xf32>, vector<16x32xf32> -> vector<16x32xf32>
    %72 = arith.addf %53, %71 : vector<16x32xf32>
    %73 = vector.extract_strided_slice %33 {offsets = [0, 16], sizes = [16, 8], strides = [1, 1]} : vector<16x32xf32> to vector<16x8xf32>
    %74 = vector.extract_strided_slice %35 {offsets = [16, 0], sizes = [8, 16], strides = [1, 1]} : vector<64x16xf32> to vector<8x16xf32>
    %75 = vector.extract_strided_slice %35 {offsets = [48, 0], sizes = [8, 16], strides = [1, 1]} : vector<64x16xf32> to vector<8x16xf32>
    %cst_24 = arith.constant dense<0.000000e+00> : vector<16x16xf32>
    %76 = tpu.matmul %73, %74, %cst_24 {dimension_numbers = #tpu.dot_dimension_numbers<[1], [0], [0], [1], [0, 0, 1, 1], [], []>} : vector<16x8xf32>, vector<8x16xf32>, vector<16x16xf32> -> vector<16x16xf32>
    %77 = arith.addf %76, %9 : vector<16x16xf32>
    %cst_25 = arith.constant dense<0xFF800000> : vector<16xf32>
    %78 = vector.multi_reduction <maximumf>, %77, %cst_25 [1] : vector<16x16xf32> to vector<16xf32>
    %79 = vector.shape_cast %78 : vector<16xf32> to vector<16x1xf32>
    %80 = vector.broadcast %79 : vector<16x1xf32> to vector<16x16xf32>
    %81 = arith.subf %77, %80 : vector<16x16xf32>
    %82 = math.exp %81 : vector<16x16xf32>
    %cst_26 = arith.constant dense<0.000000e+00> : vector<16xf32>
    %83 = vector.multi_reduction <add>, %82, %cst_26 [1] : vector<16x16xf32> to vector<16xf32>
    %84 = vector.shape_cast %83 : vector<16xf32> to vector<16x1xf32>
    %85 = tpu.reciprocal %84 {approx = true} : vector<16x1xf32> -> vector<16x1xf32>
    %86 = vector.broadcast %85 : vector<16x1xf32> to vector<16x16xf32>
    %87 = arith.mulf %82, %86 : vector<16x16xf32>
    %cst_27 = arith.constant dense<0.000000e+00> : vector<16x8xf32>
    %88 = tpu.matmul %87, %75, %cst_27 {dimension_numbers = #tpu.dot_dimension_numbers<[1], [1], [0], [0], [0, 0, 1, 0], [], []>} : vector<16x16xf32>, vector<8x16xf32>, vector<16x8xf32> -> vector<16x8xf32>
    %c136 = arith.constant 136 : index
    %c0_28 = arith.constant 0 : index
    %89 = vector.load %arg2[%c136, %c0_28] : memref<312x128xf32, #tpu.memory_space<vmem>>, vector<8x32xf32>
    %cst_29 = arith.constant dense<0.000000e+00> : vector<16x32xf32>
    %90 = tpu.matmul %88, %89, %cst_29 {dimension_numbers = #tpu.dot_dimension_numbers<[1], [0], [0], [1], [0, 0, 1, 1], [], []>} : vector<16x8xf32>, vector<8x32xf32>, vector<16x32xf32> -> vector<16x32xf32>
    %91 = arith.addf %72, %90 : vector<16x32xf32>
    %92 = vector.extract_strided_slice %33 {offsets = [0, 24], sizes = [16, 8], strides = [1, 1]} : vector<16x32xf32> to vector<16x8xf32>
    %93 = vector.extract_strided_slice %35 {offsets = [24, 0], sizes = [8, 16], strides = [1, 1]} : vector<64x16xf32> to vector<8x16xf32>
    %94 = vector.extract_strided_slice %35 {offsets = [56, 0], sizes = [8, 16], strides = [1, 1]} : vector<64x16xf32> to vector<8x16xf32>
    %cst_30 = arith.constant dense<0.000000e+00> : vector<16x16xf32>
    %95 = tpu.matmul %92, %93, %cst_30 {dimension_numbers = #tpu.dot_dimension_numbers<[1], [0], [0], [1], [0, 0, 1, 1], [], []>} : vector<16x8xf32>, vector<8x16xf32>, vector<16x16xf32> -> vector<16x16xf32>
    %96 = arith.addf %95, %9 : vector<16x16xf32>
    %cst_31 = arith.constant dense<0xFF800000> : vector<16xf32>
    %97 = vector.multi_reduction <maximumf>, %96, %cst_31 [1] : vector<16x16xf32> to vector<16xf32>
    %98 = vector.shape_cast %97 : vector<16xf32> to vector<16x1xf32>
    %99 = vector.broadcast %98 : vector<16x1xf32> to vector<16x16xf32>
    %100 = arith.subf %96, %99 : vector<16x16xf32>
    %101 = math.exp %100 : vector<16x16xf32>
    %cst_32 = arith.constant dense<0.000000e+00> : vector<16xf32>
    %102 = vector.multi_reduction <add>, %101, %cst_32 [1] : vector<16x16xf32> to vector<16xf32>
    %103 = vector.shape_cast %102 : vector<16xf32> to vector<16x1xf32>
    %104 = tpu.reciprocal %103 {approx = true} : vector<16x1xf32> -> vector<16x1xf32>
    %105 = vector.broadcast %104 : vector<16x1xf32> to vector<16x16xf32>
    %106 = arith.mulf %101, %105 : vector<16x16xf32>
    %cst_33 = arith.constant dense<0.000000e+00> : vector<16x8xf32>
    %107 = tpu.matmul %106, %94, %cst_33 {dimension_numbers = #tpu.dot_dimension_numbers<[1], [1], [0], [0], [0, 0, 1, 0], [], []>} : vector<16x16xf32>, vector<8x16xf32>, vector<16x8xf32> -> vector<16x8xf32>
    %c144 = arith.constant 144 : index
    %c0_34 = arith.constant 0 : index
    %108 = vector.load %arg2[%c144, %c0_34] : memref<312x128xf32, #tpu.memory_space<vmem>>, vector<8x32xf32>
    %cst_35 = arith.constant dense<0.000000e+00> : vector<16x32xf32>
    %109 = tpu.matmul %107, %108, %cst_35 {dimension_numbers = #tpu.dot_dimension_numbers<[1], [0], [0], [1], [0, 0, 1, 1], [], []>} : vector<16x8xf32>, vector<8x32xf32>, vector<16x32xf32> -> vector<16x32xf32>
    %110 = arith.addf %91, %109 : vector<16x32xf32>
    %111 = arith.addf %0, %110 : vector<16x32xf32>
    %112 = vector.broadcast %6 : vector<1x32xf32> to vector<16x32xf32>
    %113 = arith.addf %111, %112 : vector<16x32xf32>
    %cst_36 = arith.constant dense<0.000000e+00> : vector<16xf32>
    %114 = vector.multi_reduction <add>, %113, %cst_36 [1] : vector<16x32xf32> to vector<16xf32>
    %115 = vector.shape_cast %114 : vector<16xf32> to vector<16x1xf32>
    %cst_37 = arith.constant 3.200000e+01 : f32
    %116 = vector.broadcast %cst_37 : f32 to vector<16x1xf32>
    %117 = arith.divf %115, %116 : vector<16x1xf32>
    %118 = vector.broadcast %117 : vector<16x1xf32> to vector<16x32xf32>
    %119 = arith.subf %113, %118 : vector<16x32xf32>
    %120 = arith.mulf %119, %119 : vector<16x32xf32>
    %cst_38 = arith.constant dense<0.000000e+00> : vector<16xf32>
    %121 = vector.multi_reduction <add>, %120, %cst_38 [1] : vector<16x32xf32> to vector<16xf32>
    %122 = vector.shape_cast %121 : vector<16xf32> to vector<16x1xf32>
    %cst_39 = arith.constant 3.200000e+01 : f32
    %123 = vector.broadcast %cst_39 : f32 to vector<16x1xf32>
    %124 = arith.divf %122, %123 : vector<16x1xf32>
    %125 = vector.broadcast %117 : vector<16x1xf32> to vector<16x32xf32>
    %126 = arith.subf %113, %125 : vector<16x32xf32>
    %cst_40 = arith.constant 9.99999974E-6 : f32
    %127 = vector.broadcast %cst_40 : f32 to vector<16x1xf32>
    %128 = arith.addf %124, %127 : vector<16x1xf32>
    %129 = math.rsqrt %128 : vector<16x1xf32>
    %130 = vector.broadcast %129 : vector<16x1xf32> to vector<16x32xf32>
    %131 = arith.mulf %126, %130 : vector<16x32xf32>
    %132 = vector.broadcast %4 : vector<1x32xf32> to vector<16x32xf32>
    %133 = arith.mulf %131, %132 : vector<16x32xf32>
    %134 = vector.broadcast %5 : vector<1x32xf32> to vector<16x32xf32>
    %135 = arith.addf %133, %134 : vector<16x32xf32>
    %c152 = arith.constant 152 : index
    %c0_41 = arith.constant 0 : index
    %136 = vector.load %arg2[%c152, %c0_41] : memref<312x128xf32, #tpu.memory_space<vmem>>, vector<32x128xf32>
    %cst_42 = arith.constant dense<0.000000e+00> : vector<16x128xf32>
    %137 = tpu.matmul %135, %136, %cst_42 {dimension_numbers = #tpu.dot_dimension_numbers<[1], [0], [0], [1], [0, 0, 1, 1], [], []>} : vector<16x32xf32>, vector<32x128xf32>, vector<16x128xf32> -> vector<16x128xf32>
    %138 = vector.broadcast %8 : vector<1x128xf32> to vector<16x128xf32>
    %139 = arith.addf %137, %138 : vector<16x128xf32>
    %cst_43 = arith.constant 0.000000e+00 : f32
    %140 = vector.broadcast %cst_43 : f32 to vector<16x128xf32>
    %141 = arith.maximumf %139, %140 : vector<16x128xf32>
    %c184 = arith.constant 184 : index
    %c0_44 = arith.constant 0 : index
    %142 = vector.load %arg2[%c184, %c0_44] : memref<312x128xf32, #tpu.memory_space<vmem>>, vector<128x32xf32>
    %cst_45 = arith.constant dense<0.000000e+00> : vector<16x32xf32>
    %143 = tpu.matmul %141, %142, %cst_45 {dimension_numbers = #tpu.dot_dimension_numbers<[1], [0], [0], [1], [0, 0, 1, 1], [], []>} : vector<16x128xf32>, vector<128x32xf32>, vector<16x32xf32> -> vector<16x32xf32>
    %144 = vector.broadcast %7 : vector<1x32xf32> to vector<16x32xf32>
    %145 = arith.addf %143, %144 : vector<16x32xf32>
    %146 = arith.addf %113, %145 : vector<16x32xf32>
    %c0_46 = arith.constant 0 : index
    %c0_47 = arith.constant 0 : index
    %147 = vector.load %arg3[%c0_46, %c0_47] : memref<16x32xf32, #tpu.memory_space<vmem>>, vector<16x32xf32>
    tpu.vector_store %arg3[%c0_46, %c0_47], %146 {strides = array<i32>} : memref<16x32xf32, #tpu.memory_space<vmem>>, vector<16x32xf32>,
    return
  }
  func.func @transform_0(%arg0: i32) -> (i32, i32) {
    %c0_i32 = arith.constant 0 : i32
    %c0_i32_0 = arith.constant 0 : i32
    %c0_i32_1 = arith.constant 0 : i32
    return %c0_i32, %c0_i32_0 : i32, i32
  }
  func.func @transform_1(%arg0: i32) -> (i32, i32) {
    %c0_i32 = arith.constant 0 : i32
    %c0_i32_0 = arith.constant 0 : i32
    %c0_i32_1 = arith.constant 0 : i32
    return %c0_i32, %c0_i32_0 : i32, i32
  }
  func.func @transform_2(%arg0: i32) -> (i32, i32) {
    %c0_i32 = arith.constant 0 : i32
    %c0_i32_0 = arith.constant 0 : i32
    %c0_i32_1 = arith.constant 0 : i32
    return %c0_i32, %c0_i32_0 : i32, i32
  }
}

</mosaic_0001>

<bundles_post_ra>
// kernel: block_forward.1
= control target key start
LH: loop header
LB: loop body
LE: loop exit
PB: predicated region body
PF: predicated region fallthrough
CT: control target
= control target key end

     0   :  { %7 = vsyncpa [#allocation3], 0  ;;  %s2215_s0 = inlined_call_operand.hbm [shape: f32[16,32], index: 0, kind: input, shape index: {}]   ;;  %s2216_s1 = inlined_call_operand.hbm [shape: f32[312,128], index: 1, kind: input, shape index: {}]   ;;  %s2217_s2 = inlined_call_operand.hbm [shape: f32[16,32], index: 2, kind: output, shape index: {}]  }
   0x1   :  { %8 = vsyncpa [#allocation6], 0 }
   0x2   :  { %9 = vsyncpa [#allocation4], 0  ;;  %s2014_s9 = smov [#allocation2]  }
   0x3   :  { %s15_s10 = sshll.u32 %s2014_s9, 4  ;;  %s16_s10 = int_to_ptr.vmem [resolvable:$true] %s15_s10 }
   0x4   :  { %s1956_s11 = scalar_lea.vmem %s16_s10, 256  ;;  %p1961_p1 = scmp.lt.s32.totalorder %s16_s10, %s16_s10 }
   0x5   :  { %p1957_p0 = scmp.ne.s32.totalorder %s16_s10, %s1956_s11  ;;  %p1962_p2 = scmp.lt.s32.totalorder %s1956_s11, %s1956_s11 }
   0x7   :  { %p1963_p3 = por %p1962_p2, %p1961_p1 }
   0x9   :  { %p1964_p4 = pnand %p1963_p3, %p1957_p0 }
   0xb   :  { %1967 = shalt.err (!%p1964_p4)
}
   0xc   :  { %s2015_s12 = smov 128   ;;  %s2016_s13 = smov 8  }
   0xd   :  { %21 = dma.hbm_to_vmem [thread:$0]  %s2215_s0, 256, %s16_s10, [#allocation3], %s2015_s12, %s2015_s12, %s2016_s13  }
   0xe   :  { %s2017_s16 = smov [#allocation5]  }
   0xf   :  { %s27_s17 = sshll.u32 %s2017_s16, 4  ;;  %s28_s17 = int_to_ptr.vmem [resolvable:$true] %s27_s17 }
  0x10   :  { %s1976_s18 = scalar_lea.vmem %s28_s17, 4992  ;;  %p1981_p6 = scmp.lt.s32.totalorder %s28_s17, %s28_s17 }
  0x11   :  { %p1977_p5 = scmp.ne.s32.totalorder %s28_s17, %s1976_s18  ;;  %p1982_p7 = scmp.lt.s32.totalorder %s1976_s18, %s1976_s18 }
  0x13   :  { %p1983_p8 = por %p1982_p7, %p1981_p6 }
  0x15   :  { %p1984_p9 = pnand %p1983_p8, %p1977_p5 }
  0x17   :  { %1987 = shalt.err (!%p1984_p9)
}
  0x18   :  { %33 = dma.hbm_to_vmem [thread:$0]  %s2216_s1, 4992, %s28_s17, [#allocation6], %s2015_s12, %s2015_s12, %s2016_s13  }
  0x19   :  { %2008 = dma.done.wait [#allocation3], 256  }
  0x1a   :  { %2009 = vsyncadd [#allocation3], 4294967040 }
  0x1b   :  { %2010 = dma.done.wait [#allocation6], 4992  }
  0x1c   :  { %2011 = vsyncadd [#allocation6], 4294962304  ;;  %vm45_vm0 = vcmask 261120   ;;  %v2049_v0 = vld [vmem:[#allocation2] sm:$0xff]  ;;  %v2051_v1 = vld [vmem:[#allocation2 + $0x8] sm:$0xff]  ;;  %v73_v23 = vlaneseq  ;;  %vm307_vm1 = vcmask 64512  }
  0x1d   :  { %v46_v2 = vsel %vm45_vm0, %v2049_v0, 0.0  ;;  %v49_v3 = vsel %vm45_vm0, %v2051_v1, 0.0  ;;  %v88_v14 = vld [vmem:[#allocation5 + $0x30] sm:$0xff]  ;;  %v87_v15 = vld [vmem:[#allocation5 + $0x28] sm:$0xff]  ;;  %v86_v16 = vld [vmem:[#allocation5 + $0x20] sm:$0xff]  ;;  %s2018_s0 = smov 120  }
  0x1e   :  { %47 = vadd.xlane.f32.xlu0 %v46_v2  ;;  %1767 = vmatprep.subr.mxu1 %v88_v14  ;;  %v85_v17 = vld [vmem:[#allocation5 + $0x18] sm:$0xff]  ;;  %v2061_v25 = vshrl.u32 %v73_v23, 7  ;;  %v2064_v27 = vld [vmem:[#allocation5] sm:$0xff]  ;;  %v172_v47 = vld [vmem:[#allocation5 + $0x48] sm:$0xff]  ;;  %vm389_vm2 = vcmask 130048   ;;  %s2019_s1 = smov 112  }
  0x1f   :  { %1768 = vmatpush3.msra.mxu1 %v88_v14  ;;  %v170_v39 = vld [vmem:[#allocation5 + $0x38] sm:$0xff]  ;;  %v171_v40 = vld [vmem:[#allocation5 + $0x40] sm:$0xff]  ;;  %v173_v48 = vld [vmem:[#allocation5 + $0x50] sm:$0xff]  ;;  %s2020_s21 = smov 104   ;;  %s2021_s22 = smov [#allocation7]  }
  0x20   :  { %1769 = vmatprep.subr.mxu1 %v87_v15  ;;  %v75_v26 = vsub.s32 0, %v2061_v25  ;;  %v81_v28 = vsub.s32 1, %v2061_v25  ;;  %v174_v49 = vld [vmem:[#allocation5 + $0x58] sm:$0xff]  ;;  %v175_v50 = vld [vmem:[#allocation5 + $0x60] sm:$0xff]  ;;  %v2093_v53 = vld [vmem:[#allocation5 + $0x10] sm:$0xff]  ;;  %s1636_s23 = sshll.u32 %s2021_s22, 4  ;;  %s1637_s23 = int_to_ptr.vmem [resolvable:$true] %s1636_s23 }
  0x21   :  { %1770 = vmatpush3.msra.mxu1 %v87_v15  ;;  %v2096_v56 = vld [vmem:[#allocation5 + $0x8] sm:$0xff]  ;;  %s1988_s24 = scalar_lea.vmem %s1637_s23, 256  ;;  %p1993_p11 = scmp.lt.s32.totalorder %s1637_s23, %s1637_s23 }
  0x22   :  { %50 = vadd.xlane.f32.xlu0 %v49_v3  ;;  %1771 = vmatprep.subr.mxu1 %v86_v16  ;;  %v76_v29 = vrot.slane %v2064_v27, %v75_v26  ;;  %v82_v32 = vrot.slane %v2064_v27, %v81_v28  ;;  %p1989_p10 = scmp.ne.s32.totalorder %s1637_s23, %s1988_s24  ;;  %p1994_p12 = scmp.lt.s32.totalorder %s1988_s24, %s1988_s24 }
  0x23   :  { %1772 = vmatpush3.msra.mxu1 %v86_v16 }
  0x24   :  { %1773 = vmatprep.subr.mxu1 %v85_v17  ;;  %p1995_p13 = por %p1994_p12, %p1993_p11 }
  0x25   :  { %1774 = vmatpush3.msra.mxu1 %v85_v17 }
  0x26   :  { %p1996_p0 = pnand %p1995_p13, %p1989_p10 }
  0xa7   :  { %v48_v4 = vpop.xlane.xlu0 %47 }
  0xa8   :  { %v53_v5 = vmul.f32 0.03125, %v48_v4 }
  0xaa   :  { %v55_v6 = vsub.f32 %v2049_v0, %v53_v5 }
  0xab   :  { %v51_v7 = vpop.xlane.xlu0 %50 }
  0xac   :  { %v54_v8 = vmul.f32 0.03125, %v51_v7  ;;  %v57_v9 = vmul.f32 %v55_v6, %v55_v6 }
  0xae   :  { %v56_v10 = vsub.f32 %v2051_v1, %v54_v8  ;;  %v59_v11 = vsel %vm45_vm0, %v57_v9, 0.0 }
  0xaf   :  { %60 = vadd.xlane.f32.xlu1 %v59_v11 }
  0xb0   :  { %v58_v12 = vmul.f32 %v56_v10, %v56_v10 }
  0xb2   :  { %v62_v13 = vsel %vm45_vm0, %v58_v12, 0.0 }
  0xb3   :  { %63 = vadd.xlane.f32.xlu1 %v62_v13 }
 0x138   :  { %v61_v18 = vpop.xlane.xlu1 %60 }
 0x139   :  { %v65_v19 = vmul.f32 0.03125, %v61_v18 }
 0x13b   :  { %v67_v20 = vadd.f32 1e-05, %v65_v19 }
 0x13c   :  { %v64_v21 = vpop.xlane.xlu1 %63 }
 0x13d   :  { %1908 = vrsqrt.f32 %v67_v20  ;;  %v66_v22 = vmul.f32 0.03125, %v64_v21 }
 0x13f   :  { %v68_v24 = vadd.f32 1e-05, %v66_v22 }
 0x141   :  { %1910 = vrsqrt.f32 %v68_v24 }
 0x14a   :  { %v1909_v30 = vpop.eup %1908 }
 0x14b   :  { %v71_v31 = vmul.f32 %v1909_v30, %v55_v6 }
 0x14d   :  { %v77_v33 = vmul.f32 %v76_v29, %v71_v31 }
 0x14e   :  { %v1911_v34 = vpop.eup %1910 }
 0x14f   :  { %v83_v35 = vadd.f32 %v82_v32, %v77_v33  ;;  %v72_v36 = vmul.f32 %v1911_v34, %v56_v10 }
 0x151   :  { %1775 = vmatprep.mubr.msk.f32.mxu1 %vm45_vm0, %v83_v35  ;;  %v78_v37 = vmul.f32 %v76_v29, %v72_v36  ;;  %v177_v36 = vld [vmem:[#allocation5 + $0x70] sm:$0xff] }
 0x153   :  { %v84_v38 = vadd.f32 %v82_v32, %v78_v37  ;;  %v686_v37 = vld [vmem:[#allocation5 + $0x80] sm:$0xff] }
 0x155   :  { %1776 = vmatmul.mubr.msk.f32.vlgmr.msra.gmra.mxu1 %vm45_vm0, %v84_v38  ;;  %1778 = vmatprep.subr.msk.mxu1 %vm45_vm0, %v84_v38 }
 0x156   :  { %1779 = vmatpush3.xpose.msk.msra.mxu1 %vm45_vm0, %v84_v38  ;;  %1782 = vmatprep.mubr.msk.f32.mxu1 %vm45_vm0, %v170_v39 }
 0x157   :  { %1780 = vmatprep.subr.msk.mxu1 %vm45_vm0, %v83_v35 }
 0x15a   :  { %1781 = vmatpush3.xpose.msk.msra.mxu1 %vm45_vm0, %v83_v35  ;;  %v176_v35 = vld [vmem:[#allocation5 + $0x68] sm:$0xff] }
 0x15d   :  { %1783 = vmatmul.mubr.msk.f32.vlgmr.msra.gmra.mxu1 %vm45_vm0, %v171_v40 }
 0x15e   :  { %1785 = vmatprep.mubr.msk.f32.mxu1 %vm45_vm0, %v172_v47 }
 0x161   :  { %1786 = vmatmul.mubr.msk.f32.gmra.mxu1 %vm45_vm0, %v173_v48 }
 0x162   :  { %1788 = vmatprep.mubr.msk.f32.mxu1 %vm45_vm0, %v174_v49 }
 0x165   :  { %1789 = vmatmul.mubr.msk.f32.gmra.mxu1 %vm45_vm0, %v175_v50 }
 0x166   :  { %1791 = vmatprep.mubr.msk.f32.mxu1 %vm45_vm0, %v176_v35 }
 0x169   :  { %1792 = vmatmul.mubr.msk.f32.gmra.mxu1 %vm45_vm0, %v177_v36 }
 0x215   :  { %v2077_v41 = vpop.f32.mrf.mxu1 }
 0x216   :  { %499 = vrot.lane.b32.xlu1 %v2077_v41, %s2018_s0 }
 0x217   :  { %v2080_v42 = vpop.f32.mrf.mxu1 }
 0x218   :  { %497 = vrot.lane.b32.xlu0 %v2080_v42, %s2018_s0  ;;  %1796 = vmatprep.mubr.msk.f32.mxu0 %vm307_vm1, %v2080_v42 }
 0x21d   :  { %v1784_v43 = vpop.f32.mrf.mxu1 }
 0x21f   :  { %v268_v44 = vpop.f32.mrf.mxu1 }
 0x220   :  { %1794 = vmatprep.subr.mxu0 %v268_v44 }
 0x221   :  { %1795 = vmatpush3.msra.mxu0 %v268_v44  ;;  %v2107_v13 = vpop.f32.mrf.mxu1 }
 0x222   :  { %1797 = vmatmul.mubr.msk.f32.vlgmr.msra.gmra.mxu0 %vm307_vm1, %v2077_v41  ;;  %1804 = vmatprep.subr.mxu0 %v1784_v43 }
 0x223   :  { %1805 = vmatpush3.msra.mxu0 %v1784_v43  ;;  %v278_v14 = vpop.f32.mrf.mxu1 }
 0x225   :  { %v1790_v15 = vpop.f32.mrf.mxu1 }
 0x226   :  { %1809 = vmatprep.subr.msk.mxu0 %vm389_vm2, %v1790_v15 }
 0x227   :  { %v288_v16 = vpop.f32.mrf.mxu1 }
 0x228   :  { %1799 = vmatprep.subr.msk.mxu1 %vm389_vm2, %v288_v16 }
 0x229   :  { %1800 = vmatpush3.xpose.msk.msra.mxu1 %vm389_vm2, %v288_v16  ;;  %v2127_v50 = vpop.f32.mrf.mxu1 }
 0x22a   :  { %1814 = vmatprep.subr.mxu1 %v686_v37 }
 0x288   :  { %v500_v46 = vpop.permute.xlu1 %499 }
 0x28a   :  { %v498_v45 = vpop.permute.xlu0 %497 }
 0x28b   :  { %1806 = vmatprep.mubr.msk.f32.mxu0 %vm307_vm1, %v498_v45 }
 0x28c   :  { %1807 = vmatmul.mubr.msk.f32.vlgmr.msra.gmra.mxu0 %vm307_vm1, %v500_v46 }
 0x28d   :  { %1810 = vmatpush3.xpose.msk.msra.mxu0 %vm389_vm2, %v1790_v15 }
 0x2e2   :  { %v1798_v51 = vpop.f32.mrf.mxu0 }
 0x2e3   :  { %v386_v6 = vadd.f32 %v1798_v51, %v2093_v53  ;;  %v496_v51 = vld [vmem:[#allocation5 + $0x78] sm:$0xff] }
 0x2e4   :  { %v380_v52 = vpop.f32.mrf.mxu0  ;;  %1819 = vmatprep.subr.mxu0 %v496_v51 }
 0x2e5   :  { %v381_v9 = vadd.f32 %v380_v52, %v2096_v56  ;;  %v393_v11 = vsel %vm389_vm2, %v386_v6, -inf  ;;  %v298_v52 = vpop.f32.mrf.mxu1 }
 0x2e7   :  { %v390_v12 = vsel %vm389_vm2, %v381_v9, -inf }
 0x34c   :  { %v1808_v54 = vpop.f32.mrf.mxu0 }
 0x34d   :  { %v577_v55 = vadd.f32 %v1808_v54, %v2093_v53  ;;  %v1038_v54 = vld [vmem:[#allocation5 + $0x88] sm:$0xff] }
 0x34e   :  { %v571_v57 = vpop.f32.mrf.mxu0 }
 0x34f   :  { %v572_v58 = vadd.f32 %v571_v57, %v2096_v56  ;;  %v583_v59 = vsel %vm389_vm2, %v577_v55, -inf }
 0x350   :  { %584 = vmax.xlane.f32.xlu0 %v583_v59 }
 0x351   :  { %v580_v60 = vsel %vm389_vm2, %v572_v58, -inf }
 0x352   :  { %581 = vmax.xlane.f32.xlu1 %v580_v60 }
 0x3d9   :  { %v585_v61 = vpop.xlane.xlu0 %584 }
 0x3da   :  { %v587_v62 = vsub.f32 %v577_v55, %v585_v61 }
 0x3db   :  { %v582_v63 = vpop.xlane.xlu1 %581 }
 0x3dc   :  { %v590_v2 = vmul.f32 1.442695, %v587_v62  ;;  %v586_v3 = vsub.f32 %v572_v58, %v582_v63 }
 0x3de   :  { %1912 = vpow2.f32 %v590_v2  ;;  %v588_v4 = vmul.f32 1.442695, %v586_v3 }
 0x3e0   :  { %1914 = vpow2.f32 %v588_v4 }
 0x3eb   :  { %v1913_v5 = vpop.eup %1912 }
 0x3ec   :  { %v595_v7 = vsel %vm389_vm2, %v1913_v5, 0.0 }
 0x3ed   :  { %v1915_v8 = vpop.eup %1914  ;;  %596 = vadd.xlane.f32.xlu1 %v595_v7 }
 0x3ee   :  { %v592_v10 = vsel %vm389_vm2, %v1915_v8, 0.0 }
 0x3ef   :  { %593 = vadd.xlane.f32.xlu0 %v592_v10 }
 0x3f1   :  { %394 = vmax.xlane.f32.xlu1 %v393_v11 }
 0x3f3   :  { %391 = vmax.xlane.f32.xlu0 %v390_v12 }
 0x476   :  { %v597_v17 = vpop.xlane.xlu1 %596 }
 0x477   :  { %1916 = vrcp.f32 %v597_v17 }
 0x478   :  { %v594_v18 = vpop.xlane.xlu0 %593 }
 0x479   :  { %1918 = vrcp.f32 %v594_v18 }
 0x47a   :  { %v395_v19 = vpop.xlane.xlu1 %394 }
 0x47b   :  { %v397_v20 = vsub.f32 %v386_v6, %v395_v19 }
 0x47c   :  { %v392_v21 = vpop.xlane.xlu0 %391 }
 0x47d   :  { %v400_v22 = vmul.f32 1.442695, %v397_v20  ;;  %v396_v23 = vsub.f32 %v381_v9, %v392_v21 }
 0x47f   :  { %1920 = vpow2.f32 %v400_v22  ;;  %v398_v24 = vmul.f32 1.442695, %v396_v23 }
 0x481   :  { %1922 = vpow2.f32 %v398_v24 }
 0x484   :  { %v1917_v26 = vpop.eup %1916 }
 0x485   :  { %v601_v30 = vmul.f32 %v1917_v26, %v1913_v5 }
 0x486   :  { %v1919_v28 = vpop.eup %1918 }
 0x487   :  { %v600_v29 = vmul.f32 %v1919_v28, %v1915_v8 }
 0x489   :  { %1811 = vmatprep.mubr.msk.f32.mxu0 %vm389_vm2, %v600_v29 }
 0x48a   :  { %1812 = vmatmul.mubr.msk.f32.vlgmr.msra.gmra.mxu0 %vm389_vm2, %v601_v30 }
 0x48b   :  { %1820 = vmatpush3.msra.mxu0 %v496_v51 }
 0x48c   :  { %v1921_v31 = vpop.eup %1920  ;;  %1829 = vmatprep.subr.msk.mxu0 %vm389_vm2, %v298_v52 }
 0x48d   :  { %v405_v32 = vsel %vm389_vm2, %v1921_v31, 0.0 }
 0x48e   :  { %v1923_v33 = vpop.eup %1922  ;;  %406 = vadd.xlane.f32.xlu1 %v405_v32 }
 0x48f   :  { %v402_v34 = vsel %vm389_vm2, %v1923_v33, 0.0 }
 0x490   :  { %403 = vadd.xlane.f32.xlu0 %v402_v34 }
 0x49f   :  { %851 = vrot.lane.b32.xlu1 %v2077_v41, %s2019_s1 }
 0x4a6   :  { %849 = vrot.lane.b32.xlu0 %v2080_v42, %s2019_s1 }
 0x517   :  { %v407_v38 = vpop.xlane.xlu1 %406 }
 0x518   :  { %1924 = vrcp.f32 %v407_v38 }
 0x519   :  { %v404_v39 = vpop.xlane.xlu0 %403 }
 0x51a   :  { %1926 = vrcp.f32 %v404_v39 }
 0x51b   :  { %v852_v49 = vpop.permute.xlu1 %851 }
 0x51d   :  { %v850_v48 = vpop.permute.xlu0 %849 }
 0x525   :  { %v1925_v40 = vpop.eup %1924 }
 0x526   :  { %v411_v45 = vmul.f32 %v1925_v40, %v1921_v31  ;;  %v1311_v40 = vld [vmem:[#allocation5 + $0x90] sm:$0xff] }
 0x527   :  { %v1927_v43 = vpop.eup %1926 }
 0x528   :  { %v410_v44 = vmul.f32 %v1927_v43, %v1923_v33 }
 0x52a   :  { %1801 = vmatprep.mubr.msk.f32.mxu1 %vm389_vm2, %v410_v44 }
 0x52b   :  { %1802 = vmatmul.mubr.msk.f32.vlgmr.msra.gmra.mxu1 %vm389_vm2, %v411_v45 }
 0x52c   :  { %1815 = vmatpush3.msra.mxu1 %v686_v37 }
 0x52d   :  { %1824 = vmatprep.subr.mxu1 %v278_v14 }
 0x54a   :  { %v1813_v46 = vpop.f32.mrf.mxu0 }
 0x54c   :  { %v677_v47 = vpop.f32.mrf.mxu0 }
 0x54d   :  { %1816 = vmatprep.mubr.msk.f32.mxu1 %vm307_vm1, %v677_v47 }
 0x54e   :  { %1817 = vmatmul.mubr.msk.f32.vlgmr.msra.gmra.mxu1 %vm307_vm1, %v1813_v46 }
 0x54f   :  { %1825 = vmatpush3.msra.mxu1 %v278_v14  ;;  %1826 = vmatprep.mubr.msk.f32.mxu1 %vm307_vm1, %v850_v48 }
 0x550   :  { %1834 = vmatprep.subr.mxu1 %v1038_v54 }
 0x552   :  { %1827 = vmatmul.mubr.msk.f32.vlgmr.msra.gmra.mxu1 %vm307_vm1, %v852_v49 }
 0x553   :  { %1835 = vmatpush3.msra.mxu1 %v1038_v54 }
 0x554   :  { %1844 = vmatprep.subr.msk.mxu1 %vm389_vm2, %v2127_v50 }
 0x5eb   :  { %v1803_v55 = vpop.f32.mrf.mxu1 }
 0x5ed   :  { %v487_v57 = vpop.f32.mrf.mxu1 }
 0x5ee   :  { %1821 = vmatprep.mubr.msk.f32.mxu0 %vm307_vm1, %v487_v57  ;;  %v1399_v57 = vsub.s32 4, %v2061_v25 }
 0x5ef   :  { %1822 = vmatmul.mubr.msk.f32.vlgmr.msra.gmra.mxu0 %vm307_vm1, %v1803_v55 }
 0x5f0   :  { %1830 = vmatpush3.xpose.msk.msra.mxu0 %vm389_vm2, %v298_v52 }
 0x5f1   :  { %1839 = vmatprep.subr.mxu0 %v2107_v13 }
 0x60e   :  { %v2136_v58 = vpop.f32.mrf.mxu1 }
 0x610   :  { %v2138_v59 = vpop.f32.mrf.mxu1 }
 0x612   :  { %v1828_v60 = vpop.f32.mrf.mxu1 }
 0x613   :  { %v929_v61 = vadd.f32 %v1828_v60, %v2093_v53 }
 0x614   :  { %v923_v62 = vpop.f32.mrf.mxu1 }
 0x615   :  { %v924_v63 = vadd.f32 %v923_v62, %v2096_v56  ;;  %v935_v2 = vsel %vm389_vm2, %v929_v61, -inf }
 0x616   :  { %936 = vmax.xlane.f32.xlu0 %v935_v2 }
 0x617   :  { %v932_v3 = vsel %vm389_vm2, %v924_v63, -inf }
 0x618   :  { %933 = vmax.xlane.f32.xlu1 %v932_v3 }
 0x69f   :  { %v937_v4 = vpop.xlane.xlu0 %936 }
 0x6a0   :  { %v939_v5 = vsub.f32 %v929_v61, %v937_v4 }
 0x6a1   :  { %v934_v6 = vpop.xlane.xlu1 %933 }
 0x6a2   :  { %v942_v7 = vmul.f32 1.442695, %v939_v5  ;;  %v938_v8 = vsub.f32 %v924_v63, %v934_v6  ;;  %v1400_v63 = vrot.slane %v2064_v27, %v1399_v57  ;;  %v1447_v57 = vsub.s32 6, %v2061_v25 }
 0x6a4   :  { %1928 = vpow2.f32 %v942_v7  ;;  %v940_v9 = vmul.f32 1.442695, %v938_v8 }
 0x6a6   :  { %1930 = vpow2.f32 %v940_v9 }
 0x6b1   :  { %v1929_v10 = vpop.eup %1928 }
 0x6b2   :  { %v947_v11 = vsel %vm389_vm2, %v1929_v10, 0.0 }
 0x6b3   :  { %v1931_v12 = vpop.eup %1930  ;;  %948 = vadd.xlane.f32.xlu1 %v947_v11 }
 0x6b4   :  { %v944_v14 = vsel %vm389_vm2, %v1931_v12, 0.0 }
 0x6b5   :  { %945 = vadd.xlane.f32.xlu0 %v944_v14 }
 0x6c4   :  { %1124 = vrot.lane.b32.xlu1 %v2077_v41, %s2020_s21 }
 0x6cb   :  { %1122 = vrot.lane.b32.xlu0 %v2080_v42, %s2020_s21  ;;  %v1823_v42 = vpop.f32.mrf.mxu0 }
 0x6cc   :  { %v846_v43 = vadd.f32 %v1823_v42, %v2136_v58  ;;  %v1546_v42 = vld [vmem:[#allocation5 + $0x128] sm:$0xff] }
 0x6cd   :  { %v840_v22 = vpop.f32.mrf.mxu0 }
 0x6ce   :  { %v841_v58 = vadd.f32 %v840_v22, %v2138_v59  ;;  %v1545_v22 = vld [vmem:[#allocation5 + $0x120] sm:$0xff] }
 0x73c   :  { %v949_v15 = vpop.xlane.xlu1 %948 }
 0x73d   :  { %1932 = vrcp.f32 %v949_v15 }
 0x73e   :  { %v946_v16 = vpop.xlane.xlu0 %945 }
 0x73f   :  { %1934 = vrcp.f32 %v946_v16 }
 0x740   :  { %v1125_v41 = vpop.permute.xlu1 %1124 }
 0x742   :  { %v1123_v21 = vpop.permute.xlu0 %1122 }
 0x74a   :  { %v1933_v17 = vpop.eup %1932 }
 0x74b   :  { %v953_v20 = vmul.f32 %v1933_v17, %v1929_v10 }
 0x74c   :  { %v1935_v18 = vpop.eup %1934 }
 0x74d   :  { %v952_v19 = vmul.f32 %v1935_v18, %v1931_v12  ;;  %v1444_v18 = vld [vmem:[#allocation5 + $0xb0] sm:$0xff] }
 0x74f   :  { %1831 = vmatprep.mubr.msk.f32.mxu0 %vm389_vm2, %v952_v19  ;;  %v1443_v19 = vld [vmem:[#allocation5 + $0xa8] sm:$0xff] }
 0x750   :  { %1832 = vmatmul.mubr.msk.f32.vlgmr.msra.gmra.mxu0 %vm389_vm2, %v953_v20  ;;  %v1442_v20 = vld [vmem:[#allocation5 + $0xa0] sm:$0xff] }
 0x751   :  { %1840 = vmatpush3.msra.mxu0 %v2107_v13  ;;  %1841 = vmatprep.mubr.msk.f32.mxu0 %vm307_vm1, %v1123_v21  ;;  %v1441_v21 = vld [vmem:[#allocation5 + $0x98] sm:$0xff] }
 0x752   :  { %1849 = vmatprep.subr.mxu0 %v1311_v40 }
 0x754   :  { %1842 = vmatmul.mubr.msk.f32.vlgmr.msra.gmra.mxu0 %vm307_vm1, %v1125_v41  ;;  %v1547_v41 = vld [vmem:[#allocation5 + $0x130] sm:$0xff] }
 0x755   :  { %1850 = vmatpush3.msra.mxu0 %v1311_v40  ;;  %v1437_v40 = vsub.s32 3, %v2061_v25 }
 0x756   :  { %1865 = vmatprep.subr.mxu0 %v1547_v41 }
 0x810   :  { %v1833_v23 = vpop.f32.mrf.mxu0 }
 0x812   :  { %v1029_v24 = vpop.f32.mrf.mxu0 }
 0x813   :  { %1836 = vmatprep.mubr.msk.f32.mxu1 %vm307_vm1, %v1029_v24  ;;  %v1543_v24 = vld [vmem:[#allocation5 + $0x110] sm:$0xff] }
 0x814   :  { %1837 = vmatmul.mubr.msk.f32.vlgmr.msra.gmra.mxu1 %vm307_vm1, %v1833_v23  ;;  %v1843_v26 = vpop.f32.mrf.mxu0  ;;  %v1544_v23 = vld [vmem:[#allocation5 + $0x118] sm:$0xff] }
 0x815   :  { %v1202_v28 = vadd.f32 %v1843_v26, %v2093_v53  ;;  %1845 = vmatpush3.xpose.msk.msra.mxu1 %vm389_vm2, %v2127_v50  ;;  %v1542_v26 = vld [vmem:[#allocation5 + $0x108] sm:$0xff] }
 0x816   :  { %v1196_v13 = vpop.f32.mrf.mxu0  ;;  %1854 = vmatprep.subr.mxu1 %v1444_v18 }
 0x817   :  { %v1197_v29 = vadd.f32 %v1196_v13, %v2096_v56  ;;  %v1208_v30 = vsel %vm389_vm2, %v1202_v28, -inf  ;;  %v1540_v13 = vld [vmem:[#allocation5 + $0xf8] sm:$0xff] }
 0x818   :  { %1209 = vmax.xlane.f32.xlu0 %v1208_v30  ;;  %v1538_v30 = vld [vmem:[#allocation5 + $0xe8] sm:$0xff] }
 0x819   :  { %v1205_v31 = vsel %vm389_vm2, %v1197_v29, -inf }
 0x81a   :  { %1206 = vmax.xlane.f32.xlu1 %v1205_v31  ;;  %v1537_v31 = vld [vmem:[#allocation5 + $0xe0] sm:$0xff] }
 0x8a1   :  { %v1210_v32 = vpop.xlane.xlu0 %1209 }
 0x8a2   :  { %v1212_v33 = vsub.f32 %v1202_v28, %v1210_v32  ;;  %v1541_v28 = vld [vmem:[#allocation5 + $0x100] sm:$0xff]  ;;  %v1536_v32 = vld [vmem:[#allocation5 + $0xd8] sm:$0xff] }
 0x8a3   :  { %v1207_v34 = vpop.xlane.xlu1 %1206 }
 0x8a4   :  { %v1215_v35 = vmul.f32 1.442695, %v1212_v33  ;;  %v1211_v36 = vsub.f32 %v1197_v29, %v1207_v34  ;;  %v1539_v29 = vld [vmem:[#allocation5 + $0xf0] sm:$0xff] }
 0x8a6   :  { %1936 = vpow2.f32 %v1215_v35  ;;  %v1213_v37 = vmul.f32 1.442695, %v1211_v36 }
 0x8a8   :  { %1938 = vpow2.f32 %v1213_v37 }
 0x8b3   :  { %v1937_v53 = vpop.eup %1936 }
 0x8b4   :  { %v1220_v38 = vsel %vm389_vm2, %v1937_v53, 0.0 }
 0x8b5   :  { %v1939_v39 = vpop.eup %1938  ;;  %1221 = vadd.xlane.f32.xlu1 %v1220_v38  ;;  %v1431_v38 = vsub.s32 2, %v2061_v25 }
 0x8b6   :  { %v1217_v56 = vsel %vm389_vm2, %v1939_v39, 0.0 }
 0x8b7   :  { %1218 = vadd.xlane.f32.xlu0 %v1217_v56  ;;  %v1432_v56 = vrot.slane %v2064_v27, %v1431_v38 }
 0x8d4   :  { %v1838_v44 = vpop.f32.mrf.mxu1 }
 0x8d5   :  { %v1121_v45 = vadd.f32 %v1838_v44, %v846_v43 }
 0x8d6   :  { %v1111_v52 = vpop.f32.mrf.mxu1 }
 0x8d7   :  { %v1120_v61 = vadd.f32 %v1111_v52, %v841_v58  ;;  %v1534_v52 = vld [vmem:[#allocation5 + $0xc8] sm:$0xff]  ;;  %v1448_v58 = vrot.slane %v2064_v27, %v1447_v57 }
 0x93e   :  { %v1222_v46 = vpop.xlane.xlu1 %1221 }
 0x93f   :  { %1940 = vrcp.f32 %v1222_v46 }
 0x940   :  { %v1219_v47 = vpop.xlane.xlu0 %1218 }
 0x941   :  { %1942 = vrcp.f32 %v1219_v47  ;;  %v1438_v47 = vrot.slane %v2064_v27, %v1437_v40 }
 0x94c   :  { %v1941_v48 = vpop.eup %1940 }
 0x94d   :  { %v1226_v51 = vmul.f32 %v1941_v48, %v1937_v53 }
 0x94e   :  { %v1943_v49 = vpop.eup %1942 }
 0x94f   :  { %v1225_v50 = vmul.f32 %v1943_v49, %v1939_v39 }
 0x951   :  { %1846 = vmatprep.mubr.msk.f32.mxu1 %vm389_vm2, %v1225_v50 }
 0x952   :  { %1847 = vmatmul.mubr.msk.f32.vlgmr.msra.gmra.mxu1 %vm389_vm2, %v1226_v51  ;;  %v1535_v51 = vld [vmem:[#allocation5 + $0xd0] sm:$0xff] }
 0x953   :  { %1855 = vmatpush3.msra.mxu1 %v1444_v18 }
 0x954   :  { %1856 = vmatprep.subr.mxu1 %v1443_v19 }
 0x955   :  { %1857 = vmatpush3.msra.mxu1 %v1443_v19 }
 0x956   :  { %1858 = vmatprep.subr.mxu1 %v1442_v20 }
 0x957   :  { %1859 = vmatpush3.msra.mxu1 %v1442_v20 }
 0x958   :  { %1860 = vmatprep.subr.mxu1 %v1441_v21 }
 0x959   :  { %1861 = vmatpush3.msra.mxu1 %v1441_v21 }
 0xa12   :  { %v1848_v54 = vpop.f32.mrf.mxu1 }
 0xa14   :  { %v1302_v55 = vpop.f32.mrf.mxu1 }
 0xa15   :  { %1851 = vmatprep.mubr.msk.f32.mxu0 %vm307_vm1, %v1302_v55  ;;  %v1532_v55 = vld [vmem:[#allocation5 + $0xb8] sm:$0xff] }
 0xa16   :  { %1852 = vmatmul.mubr.msk.f32.vlgmr.msra.gmra.mxu0 %vm307_vm1, %v1848_v54  ;;  %v1533_v54 = vld [vmem:[#allocation5 + $0xc0] sm:$0xff] }
 0xa17   :  { %1866 = vmatpush3.msra.mxu0 %v1547_v41 }
 0xa18   :  { %1867 = vmatprep.subr.mxu0 %v1546_v42 }
 0xa19   :  { %1868 = vmatpush3.msra.mxu0 %v1546_v42 }
 0xa1a   :  { %1869 = vmatprep.subr.mxu0 %v1545_v22 }
 0xa1b   :  { %1870 = vmatpush3.msra.mxu0 %v1545_v22 }
 0xa1c   :  { %1871 = vmatprep.subr.mxu0 %v1544_v23 }
 0xa1d   :  { %1872 = vmatpush3.msra.mxu0 %v1544_v23 }
 0xa1e   :  { %1873 = vmatprep.subr.mxu0 %v1543_v24 }
 0xa1f   :  { %1874 = vmatpush3.msra.mxu0 %v1543_v24 }
 0xa20   :  { %1875 = vmatprep.subr.mxu0 %v1542_v26 }
 0xa21   :  { %1876 = vmatpush3.msra.mxu0 %v1542_v26 }
 0xa22   :  { %1877 = vmatprep.subr.mxu0 %v1541_v28 }
 0xa23   :  { %1878 = vmatpush3.msra.mxu0 %v1541_v28 }
 0xa24   :  { %1879 = vmatprep.subr.mxu0 %v1540_v13 }
 0xa25   :  { %1880 = vmatpush3.msra.mxu0 %v1540_v13 }
 0xa26   :  { %1881 = vmatprep.subr.mxu0 %v1539_v29 }
 0xa27   :  { %1882 = vmatpush3.msra.mxu0 %v1539_v29 }
 0xa28   :  { %1883 = vmatprep.subr.mxu0 %v1538_v30 }
 0xa29   :  { %1884 = vmatpush3.msra.mxu0 %v1538_v30 }
 0xa2a   :  { %1885 = vmatprep.subr.mxu0 %v1537_v31 }
 0xa2b   :  { %1886 = vmatpush3.msra.mxu0 %v1537_v31 }
 0xa2c   :  { %1887 = vmatprep.subr.mxu0 %v1536_v32 }
 0xa2d   :  { %1888 = vmatpush3.msra.mxu0 %v1536_v32 }
 0xa2e   :  { %1889 = vmatprep.subr.mxu0 %v1535_v51 }
 0xa2f   :  { %1890 = vmatpush3.msra.mxu0 %v1535_v51 }
 0xa30   :  { %1891 = vmatprep.subr.mxu0 %v1534_v52 }
 0xa31   :  { %1892 = vmatpush3.msra.mxu0 %v1534_v52 }
 0xa32   :  { %1893 = vmatprep.subr.mxu0 %v1533_v54 }
 0xa33   :  { %1894 = vmatpush3.msra.mxu0 %v1533_v54 }
 0xa34   :  { %1895 = vmatprep.subr.mxu0 %v1532_v55 }
 0xa35   :  { %1896 = vmatpush3.msra.mxu0 %v1532_v55 }
 0xad6   :  { %v1853_v60 = vpop.f32.mrf.mxu0 }
 0xad7   :  { %v1394_v62 = vadd.f32 %v1853_v60, %v1121_v45 }
 0xad8   :  { %v1384_v2 = vpop.f32.mrf.mxu0 }
 0xad9   :  { %v1396_v3 = vadd.f32 %v1394_v62, %v2051_v1  ;;  %v1393_v4 = vadd.f32 %v1384_v2, %v1120_v61 }
 0xadb   :  { %v2172_v5 = vadd.f32 %v1400_v63, %v1396_v3  ;;  %v1395_v6 = vadd.f32 %v1393_v4, %v2049_v0  ;;  %v1550_v4 = vsub.s32 5, %v2061_v25 }
 0xadd   :  { %v2175_v7 = vadd.f32 %v1400_v63, %v1395_v6  ;;  %v1406_v8 = vsel %vm45_vm0, %v2172_v5, 0.0  ;;  %v1551_v6 = vrot.slane %v2064_v27, %v1550_v4 }
 0xade   :  { %1407 = vadd.xlane.f32.xlu1 %v1406_v8 }
 0xadf   :  { %v1403_v59 = vsel %vm45_vm0, %v2175_v7, 0.0 }
 0xae0   :  { %1404 = vadd.xlane.f32.xlu0 %v1403_v59 }
 0xb67   :  { %v1408_v9 = vpop.xlane.xlu1 %1407 }
 0xb68   :  { %v1410_v10 = vmul.f32 0.03125, %v1408_v9 }
 0xb69   :  { %v1405_v11 = vpop.xlane.xlu0 %1404 }
 0xb6a   :  { %v2182_v1 = vsub.f32 %v2172_v5, %v1410_v10  ;;  %v1409_v12 = vmul.f32 0.03125, %v1405_v11 }
 0xb6c   :  { %v2185_v14 = vsub.f32 %v2175_v7, %v1409_v12  ;;  %v1414_v0 = vmul.f32 %v2182_v1, %v2182_v1 }
 0xb6e   :  { %v1418_v15 = vsel %vm45_vm0, %v1414_v0, 0.0  ;;  %v1413_v16 = vmul.f32 %v2185_v14, %v2185_v14 }
 0xb6f   :  { %1419 = vadd.xlane.f32.xlu1 %v1418_v15 }
 0xb70   :  { %v1415_v17 = vsel %vm45_vm0, %v1413_v16, 0.0 }
 0xb71   :  { %1416 = vadd.xlane.f32.xlu0 %v1415_v17 }
 0xbf8   :  { %v1420_v33 = vpop.xlane.xlu1 %1419 }
 0xbf9   :  { %v1422_v34 = vmul.f32 0.03125, %v1420_v33 }
 0xbfa   :  { %v1417_v35 = vpop.xlane.xlu0 %1416 }
 0xbfb   :  { %v1424_v36 = vadd.f32 1e-05, %v1422_v34  ;;  %v1421_v37 = vmul.f32 0.03125, %v1417_v35 }
 0xbfd   :  { %1944 = vrsqrt.f32 %v1424_v36  ;;  %v1423_v53 = vadd.f32 1e-05, %v1421_v37 }
 0xbff   :  { %1946 = vrsqrt.f32 %v1423_v53 }
 0xc0a   :  { %v1945_v39 = vpop.eup %1944 }
 0xc0b   :  { %v1428_v43 = vmul.f32 %v1945_v39, %v2182_v1 }
 0xc0c   :  { %v1947_v44 = vpop.eup %1946 }
 0xc0d   :  { %v1427_v45 = vmul.f32 %v1947_v44, %v2185_v14  ;;  %v1434_v46 = vmul.f32 %v1432_v56, %v1428_v43 }
 0xc0f   :  { %v1433_v48 = vmul.f32 %v1432_v56, %v1427_v45  ;;  %v1440_v50 = vadd.f32 %v1438_v47, %v1434_v46 }
 0xc11   :  { %v1439_v49 = vadd.f32 %v1438_v47, %v1433_v48 }
 0xc13   :  { %1862 = vmatprep.mubr.msk.f32.mxu1 %vm45_vm0, %v1439_v49 }
 0xc14   :  { %1863 = vmatmul.mubr.msk.f32.vlgmr.msra.gmra.mxu1 %vm45_vm0, %v1440_v50 }
 0xcd4   :  { %v1864_v60 = vpop.f32.mrf.mxu1 }
 0xcd5   :  { %v1527_v61 = vadd.f32 %v1864_v60, %v1448_v58 }
 0xcd6   :  { %v1521_v62 = vpop.f32.mrf.mxu1 }
 0xcd7   :  { %v1522_v63 = vadd.f32 %v1521_v62, %v1448_v58  ;;  %v1531_v3 = vmax.f32 %v1527_v61, 0.0 }
 0xcd9   :  { %v1530_v2 = vmax.f32 %v1522_v63, 0.0 }
 0xcdb   :  { %1897 = vmatprep.mubr.f32.mxu0 %v1530_v2 }
 0xcdc   :  { %1898 = vmatmul.mubr.f32.vlgmr.msra.gmra.mxu0 %v1531_v3 }
 0xd9c   :  { %v1899_v8 = vpop.f32.mrf.mxu0 }
 0xd9d   :  { %v1624_v59 = vadd.f32 %v1899_v8, %v1551_v6 }
 0xd9e   :  { %v1618_v9 = vpop.f32.mrf.mxu0 }
 0xd9f   :  { %v1628_v10 = vadd.f32 %v1624_v59, %v2172_v5  ;;  %v1619_v11 = vadd.f32 %v1618_v9, %v1551_v6 }
 0xda1   :  { %1630 = vst.msk [vmem:[#allocation7 + $0x8] sm:$0xff] %vm45_vm0, %v1628_v10  ;;  %v1627_v1 = vadd.f32 %v1619_v11, %v2175_v7 }
 0xda3   :  { %1629 = vst.msk [vmem:[#allocation7] sm:$0xff] %vm45_vm0, %v1627_v1 }
 0xda4   :  { %1999 = shalt.err (!%p1996_p0)
}
 0xda5   :  { %1642 = dma.vmem_to_hbm [thread:$0]  %s1637_s23, 256, %s2217_s2, [#allocation4], %s2015_s12, %s2015_s12, %s2016_s13  }
 0xda6   :  { %2012 = dma.done.wait [#allocation4], 256  }
 0xda7   :  { %2013 = vsyncadd [#allocation4], 4294967040 }
 0xda8   :  { %1646 = vsyncpa [#allocation3], 1 }
 0xda9   :  { %1647 = vsyncpa [#allocation6], 1 }
 0xdaa   :  { %1648 = vsyncpa [#allocation4], 1 }

</bundles_post_ra>
